<compile_context>
chip_gen: v6e
topology: v6e:2x2x1
jax: 0.10.0
libtpu: 0.0.40
codegen_flags: <defaults>
</compile_context>

<pallas_src>
import jax
import jax.numpy as jnp
from jax.experimental import pallas as pl
from jax.experimental.pallas import tpu as pltpu


M_ALIGN = 128  # batch-tile granularity (full sublane*lane MXU tile on M)


def _round_up(v, m):
    return ((v + m - 1) // m) * m


def _device_kind():
    try:
        return jax.devices()[0].device_kind.lower()
    except Exception:
        return ""


def _vmem_capacity_bytes():
    # Per-TensorCore VMEM capacity; prefer the introspection API, fall back to
    # a device-kind heuristic (v7x: 64 MiB, v5e/v6e: 128 MiB).
    try:
        return int(pltpu.get_tpu_info().vmem_capacity_bytes)
    except Exception:
        pass
    return 64 * 1024 * 1024 if "v7" in _device_kind() else 128 * 1024 * 1024


def _num_tensorcores():
    return 2 if "v7" in _device_kind() else 1


def _mxu_width():
    kind = _device_kind()
    return 256 if ("v6" in kind or "v7" in kind) else 128


def _pad_dim(d, mxu_width):
    # Lane-dense padding; use the full MXU width when the dim is big enough to
    # benefit (avoids half-idle 256-wide systolic arrays on v6e/v7x), otherwise
    # pad to 128 (avoid over-padding small dims, and v5e's MXU is 128 wide).
    if mxu_width > 128 and d >= mxu_width:
        return _round_up(d, mxu_width)
    return _round_up(d, 128)


_HAS_BUFFERED = hasattr(pl, "Buffered")


def _resident_spec(shape):
    # Constant index_map -> block is loaded once and stays resident; a second
    # pipeline buffer would be pure VMEM waste, so request single-buffering.
    if _HAS_BUFFERED:
        try:
            return pl.BlockSpec(shape, lambda i: (0, 0),
                                pipeline_mode=pl.Buffered(1))
        except TypeError:
            pass
    return pl.BlockSpec(shape, lambda i: (0, 0))


def mlp_kernel(x_ref, w1_ref, b1_ref, w2_ref, b2_ref, w3_ref, b3_ref, o_ref):
    # Cast x to the MXU compute dtype inside the kernel (free VPU work) rather
    # than materializing a padded bf16 copy of x in HBM on the wrapper side.
    x = x_ref[...].astype(w1_ref.dtype)
    # Layer 1: Linear + ReLU (bf16/f32 MXU inputs, f32 accumulation).
    h = jnp.dot(x, w1_ref[...], preferred_element_type=jnp.float32)
    h = jnp.maximum(h + b1_ref[...], 0.0).astype(w2_ref.dtype)
    # Layer 2: Linear + ReLU.
    h = jnp.dot(h, w2_ref[...], preferred_element_type=jnp.float32)
    h = jnp.maximum(h + b2_ref[...], 0.0).astype(w3_ref.dtype)
    # Layer 3: Linear (no activation).
    out = jnp.dot(h, w3_ref[...], preferred_element_type=jnp.float32)
    o_ref[...] = (out + b3_ref[...]).astype(o_ref.dtype)


def prepare_params(params, *, compute_dtype=jnp.bfloat16):
    """One-time packing: transpose to (in, out), pad to lane multiples, cast.

    Do NOT call this per forward pass; the whole point is to avoid re-reading
    and re-writing the weights from HBM on every call.
    """
    w1, b1 = params["w1"], params["b1"]   # (hdim, indim), (hdim,)
    w2, b2 = params["w2"], params["b2"]   # (hdim, hdim),  (hdim,)
    w3, b3 = params["w3"], params["b3"]   # (outdim, hdim),(outdim,)
    indim, hdim, outdim = w1.shape[1], w1.shape[0], w3.shape[0]
    mxu = _mxu_width()
    indim_p = _pad_dim(indim, mxu)
    hdim_p = _pad_dim(hdim, mxu)
    outdim_p = _pad_dim(outdim, mxu)

    def pad2(a, r, c):
        return jnp.pad(a, ((0, r - a.shape[0]), (0, c - a.shape[1])))

    return {
        "w1": pad2(w1.T, indim_p, hdim_p).astype(compute_dtype),
        "w2": pad2(w2.T, hdim_p, hdim_p).astype(compute_dtype),
        "w3": pad2(w3.T, hdim_p, outdim_p).astype(compute_dtype),
        # Biases stay f32: added after f32 accumulation.
        "b1": jnp.pad(b1, (0, hdim_p - hdim)).astype(jnp.float32)[None, :],
        "b2": jnp.pad(b2, (0, hdim_p - hdim)).astype(jnp.float32)[None, :],
        "b3": jnp.pad(b3, (0, outdim_p - outdim)).astype(jnp.float32)[None, :],
        "dims": (indim, hdim, outdim),
        "padded_dims": (indim_p, hdim_p, outdim_p),
        "compute_dtype": compute_dtype,
    }


def mlp_forward(x, packed, *, block_b=None, out_dtype=None):
    """x: (B, indim). packed: output of prepare_params()."""
    B, indim = x.shape
    indim0, hdim0, outdim = packed["dims"]
    assert indim == indim0, "x feature dim does not match packed params"
    indim_p, hdim_p, outdim_p = packed["padded_dims"]
    compute_dtype = packed["compute_dtype"]
    out_dtype = x.dtype if out_dtype is None else out_dtype

    x_item = jnp.dtype(x.dtype).itemsize
    o_item = jnp.dtype(out_dtype).itemsize
    c_item = jnp.dtype(compute_dtype).itemsize

    w_bytes = (packed["w1"].size + packed["w2"].size + packed["w3"].size) * c_item
    b_bytes = (packed["b1"].size + packed["b2"].size + packed["b3"].size) * 4
    resident_bytes = (1 if _HAS_BUFFERED else 2) * (w_bytes + b_bytes)

    # Per-row VMEM cost of one batch tile: double-buffered x and out blocks,
    # two live f32 intermediates plus one compute-dtype activation copy.
    per_row = (2 * indim_p * x_item + 2 * outdim_p * o_item
               + 2 * hdim_p * 4 + hdim_p * c_item)

    capacity = _vmem_capacity_bytes()
    budget = int(0.8 * capacity)

    if block_b is None:
        # Target >= 8 grid steps (steady-state pipelining on single-TC chips,
        # >= 4 per core on 2-TC chips), multiple-of-128 rows, <= 512 rows,
        # and within the per-generation VMEM budget.
        bb = _round_up(max(1, pl.cdiv(B, 8)), M_ALIGN)
        bb = min(bb, 512, _round_up(B, M_ALIGN))
        avail = budget - resident_bytes
        if avail > per_row * M_ALIGN:
            bb = min(bb, (avail // per_row) // M_ALIGN * M_ALIGN)
        bb = max(bb, M_ALIGN)
        # Even step count on 2-TC chips so the "parallel" batch axis splits
        # evenly across both TensorCores.
        if _num_tensorcores() == 2:
            while bb > M_ALIGN and pl.cdiv(B, bb) > 1 and pl.cdiv(B, bb) % 2:
                bb -= M_ALIGN
        block_b = bb
    block_b = max(M_ALIGN, _round_up(block_b, M_ALIGN))
    # TODO(synk): K-tiled accumulation over hdim ("arbitrary" grid axis + f32
    # VMEM accumulator) for hdim too large to keep the weights resident.

    B_p = _round_up(B, block_b)
    grid = (B_p // block_b,)

    # Pad x only when needed (padded rows/cols are zero -> no effect on the
    # valid output rows); the kernel casts to compute_dtype on the VPU.
    if (B_p != B) or (indim_p != indim):
        x_in = jnp.pad(x, ((0, B_p - B), (0, indim_p - indim)))
    else:
        x_in = x

    flops = 2 * B_p * (indim_p * hdim_p + hdim_p * hdim_p + hdim_p * outdim_p)
    bytes_accessed = (x_in.size * x_item + w_bytes + b_bytes
                      + B_p * outdim_p * o_item)

    vmem_needed = resident_bytes + block_b * per_row
    vmem_limit = int(min(max(int(1.5 * vmem_needed), 32 * 1024 * 1024),
                         int(0.85 * capacity)))

    out_p = pl.pallas_call(
        mlp_kernel,
        out_shape=jax.ShapeDtypeStruct((B_p, outdim_p), out_dtype),
        grid_spec=pltpu.PrefetchScalarGridSpec(
            num_scalar_prefetch=0,
            grid=grid,
            in_specs=[
                pl.BlockSpec((block_b, indim_p), lambda i: (i, 0)),
                _resident_spec((indim_p, hdim_p)),
                _resident_spec((1, hdim_p)),
                _resident_spec((hdim_p, hdim_p)),
                _resident_spec((1, hdim_p)),
                _resident_spec((hdim_p, outdim_p)),
                _resident_spec((1, outdim_p)),
            ],
            out_specs=pl.BlockSpec((block_b, outdim_p), lambda i: (i, 0)),
        ),
        compiler_params=pltpu.CompilerParams(
            dimension_semantics=("parallel",),
            vmem_limit_bytes=vmem_limit,
        ),
        cost_estimate=pl.CostEstimate(
            flops=flops, transcendentals=0, bytes_accessed=bytes_accessed),
    )(x_in, packed["w1"], packed["b1"], packed["w2"], packed["b2"],
      packed["w3"], packed["b3"])

    if (B_p != B) or (outdim_p != outdim):
        out_p = out_p[:B, :outdim]
    return out_p


def init_params(key, indim, hdim, outdim):
    """Deterministic init mimicking PyTorch Linear default (U[-1/sqrt(fan_in), +])."""
    ks = jax.random.split(key, 6)

    def lin(kw, kb, fan_in, fan_out):
        bound = 1.0 / jnp.sqrt(fan_in)
        w = jax.random.uniform(kw, (fan_out, fan_in), jnp.float32, -bound, bound)
        b = jax.random.uniform(kb, (fan_out,), jnp.float32, -bound, bound)
        return w, b

    w1, b1 = lin(ks[0], ks[1], indim, hdim)
    w2, b2 = lin(ks[2], ks[3], hdim, hdim)
    w3, b3 = lin(ks[4], ks[5], hdim, outdim)
    return {"w1": w1, "b1": b1, "w2": w2, "b2": b2, "w3": w3, "b3": b3}


def mlp_ref(x, p):
    h = jnp.maximum(x @ p["w1"].T + p["b1"], 0.0)
    h = jnp.maximum(h @ p["w2"].T + p["b2"], 0.0)
    return h @ p["w3"].T + p["b3"]


if __name__ == "__main__":
    key = jax.random.PRNGKey(0)
    k_x, k_p = jax.random.split(key)

    # Small, deliberately non-128-aligned shapes to exercise the padding path.
    B, indim, hdim, outdim = 256, 48, 96, 10
    x = jax.random.normal(k_x, (B, indim), jnp.float32)
    params = init_params(k_p, indim, hdim, outdim)

    ref = mlp_ref(x, params)

    # f32 compute path: tight match against the pure-JAX reference.
    packed_f32 = prepare_params(params, compute_dtype=jnp.float32)
    out_f32 = jax.block_until_ready(mlp_forward(x, packed_f32))
    assert out_f32.shape == (B, outdim)
    assert jnp.allclose(out_f32, ref, atol=1e-4, rtol=1e-4)

    # bf16 compute path (default fast MXU path): looser tolerance for rounding.
    packed_bf16 = prepare_params(params)  # weights packed/cast exactly once
    out_bf16 = jax.block_until_ready(mlp_forward(x, packed_bf16))
    assert out_bf16.shape == (B, outdim)
    assert jnp.allclose(out_bf16, ref, atol=6e-2, rtol=6e-2)

    print("KERNEL_OK")
</pallas_src>

<mosaic_0001>
module attributes {stable_mosaic.version = 11 : i64} {
  func.func @mlp_kernel(%arg0: i32, %arg1: memref<128x128xf32, #tpu.memory_space<vmem>>, %arg2: memref<128x128xf32, #tpu.memory_space<vmem>>, %arg3: memref<1x128xf32, #tpu.memory_space<vmem>>, %arg4: memref<128x128xf32, #tpu.memory_space<vmem>>, %arg5: memref<1x128xf32, #tpu.memory_space<vmem>>, %arg6: memref<128x128xf32, #tpu.memory_space<vmem>>, %arg7: memref<1x128xf32, #tpu.memory_space<vmem>>, %arg8: memref<128x128xf32, #tpu.memory_space<vmem>>) attributes {dimension_semantics = [#tpu.dimension_semantics<parallel>], iteration_bounds = array<i64: 2>, scalar_prefetch = 0 : i64, scratch_operands = 0 : i64, tpu.core_type = #tpu.core_type<tc>, window_params = [{transform_indices = @transform_0, window_bounds = array<i64: 128, 128>}, {pipeline_mode = #tpu.pipeline_mode<synchronous>, transform_indices = @transform_1, window_bounds = array<i64: 128, 128>}, {pipeline_mode = #tpu.pipeline_mode<synchronous>, transform_indices = @transform_2, window_bounds = array<i64: 1, 128>}, {pipeline_mode = #tpu.pipeline_mode<synchronous>, transform_indices = @transform_3, window_bounds = array<i64: 128, 128>}, {pipeline_mode = #tpu.pipeline_mode<synchronous>, transform_indices = @transform_4, window_bounds = array<i64: 1, 128>}, {pipeline_mode = #tpu.pipeline_mode<synchronous>, transform_indices = @transform_5, window_bounds = array<i64: 128, 128>}, {pipeline_mode = #tpu.pipeline_mode<synchronous>, transform_indices = @transform_6, window_bounds = array<i64: 1, 128>}, {transform_indices = @transform_7, window_bounds = array<i64: 128, 128>}]} {
    %c0 = arith.constant 0 : index
    %c0_0 = arith.constant 0 : index
    %0 = vector.load %arg1[%c0, %c0_0] : memref<128x128xf32, #tpu.memory_space<vmem>>, vector<128x128xf32>
    %c0_1 = arith.constant 0 : index
    %c0_2 = arith.constant 0 : index
    %1 = vector.load %arg2[%c0_1, %c0_2] : memref<128x128xf32, #tpu.memory_space<vmem>>, vector<128x128xf32>
    %cst = arith.constant dense<0.000000e+00> : vector<128x128xf32>
    %2 = tpu.matmul %0, %1, %cst {dimension_numbers = #tpu.dot_dimension_numbers<[1], [0], [0], [1], [0, 0, 1, 1], [], []>} : vector<128x128xf32>, vector<128x128xf32>, vector<128x128xf32> -> vector<128x128xf32>
    %c0_3 = arith.constant 0 : index
    %c0_4 = arith.constant 0 : index
    %3 = vector.load %arg3[%c0_3, %c0_4] : memref<1x128xf32, #tpu.memory_space<vmem>>, vector<1x128xf32>
    %4 = vector.broadcast %3 : vector<1x128xf32> to vector<128x128xf32>
    %5 = arith.addf %2, %4 : vector<128x128xf32>
    %cst_5 = arith.constant 0.000000e+00 : f32
    %6 = vector.broadcast %cst_5 : f32 to vector<128x128xf32>
    %7 = arith.maximumf %5, %6 : vector<128x128xf32>
    %c0_6 = arith.constant 0 : index
    %c0_7 = arith.constant 0 : index
    %8 = vector.load %arg4[%c0_6, %c0_7] : memref<128x128xf32, #tpu.memory_space<vmem>>, vector<128x128xf32>
    %cst_8 = arith.constant dense<0.000000e+00> : vector<128x128xf32>
    %9 = tpu.matmul %7, %8, %cst_8 {dimension_numbers = #tpu.dot_dimension_numbers<[1], [0], [0], [1], [0, 0, 1, 1], [], []>} : vector<128x128xf32>, vector<128x128xf32>, vector<128x128xf32> -> vector<128x128xf32>
    %c0_9 = arith.constant 0 : index
    %c0_10 = arith.constant 0 : index
    %10 = vector.load %arg5[%c0_9, %c0_10] : memref<1x128xf32, #tpu.memory_space<vmem>>, vector<1x128xf32>
    %11 = vector.broadcast %10 : vector<1x128xf32> to vector<128x128xf32>
    %12 = arith.addf %9, %11 : vector<128x128xf32>
    %cst_11 = arith.constant 0.000000e+00 : f32
    %13 = vector.broadcast %cst_11 : f32 to vector<128x128xf32>
    %14 = arith.maximumf %12, %13 : vector<128x128xf32>
    %c0_12 = arith.constant 0 : index
    %c0_13 = arith.constant 0 : index
    %15 = vector.load %arg6[%c0_12, %c0_13] : memref<128x128xf32, #tpu.memory_space<vmem>>, vector<128x128xf32>
    %cst_14 = arith.constant dense<0.000000e+00> : vector<128x128xf32>
    %16 = tpu.matmul %14, %15, %cst_14 {dimension_numbers = #tpu.dot_dimension_numbers<[1], [0], [0], [1], [0, 0, 1, 1], [], []>} : vector<128x128xf32>, vector<128x128xf32>, vector<128x128xf32> -> vector<128x128xf32>
    %c0_15 = arith.constant 0 : index
    %c0_16 = arith.constant 0 : index
    %17 = vector.load %arg7[%c0_15, %c0_16] : memref<1x128xf32, #tpu.memory_space<vmem>>, vector<1x128xf32>
    %18 = vector.broadcast %17 : vector<1x128xf32> to vector<128x128xf32>
    %19 = arith.addf %16, %18 : vector<128x128xf32>
    %c0_17 = arith.constant 0 : index
    %c0_18 = arith.constant 0 : index
    %20 = vector.load %arg8[%c0_17, %c0_18] : memref<128x128xf32, #tpu.memory_space<vmem>>, vector<128x128xf32>
    tpu.vector_store %arg8[%c0_17, %c0_18], %19 {strides = array<i32>} : memref<128x128xf32, #tpu.memory_space<vmem>>, vector<128x128xf32>,
    return
  }
  func.func @transform_0(%arg0: i32) -> (i32, i32) {
    %c0_i32 = arith.constant 0 : i32
    %c0_i32_0 = arith.constant 0 : i32
    return %arg0, %c0_i32 : i32, i32
  }
  func.func @transform_1(%arg0: i32) -> (i32, i32) {
    %c0_i32 = arith.constant 0 : i32
    %c0_i32_0 = arith.constant 0 : i32
    %c0_i32_1 = arith.constant 0 : i32
    return %c0_i32, %c0_i32_0 : i32, i32
  }
  func.func @transform_2(%arg0: i32) -> (i32, i32) {
    %c0_i32 = arith.constant 0 : i32
    %c0_i32_0 = arith.constant 0 : i32
    %c0_i32_1 = arith.constant 0 : i32
    return %c0_i32, %c0_i32_0 : i32, i32
  }
  func.func @transform_3(%arg0: i32) -> (i32, i32) {
    %c0_i32 = arith.constant 0 : i32
    %c0_i32_0 = arith.constant 0 : i32
    %c0_i32_1 = arith.constant 0 : i32
    return %c0_i32, %c0_i32_0 : i32, i32
  }
  func.func @transform_4(%arg0: i32) -> (i32, i32) {
    %c0_i32 = arith.constant 0 : i32
    %c0_i32_0 = arith.constant 0 : i32
    %c0_i32_1 = arith.constant 0 : i32
    return %c0_i32, %c0_i32_0 : i32, i32
  }
  func.func @transform_5(%arg0: i32) -> (i32, i32) {
    %c0_i32 = arith.constant 0 : i32
    %c0_i32_0 = arith.constant 0 : i32
    %c0_i32_1 = arith.constant 0 : i32
    return %c0_i32, %c0_i32_0 : i32, i32
  }
  func.func @transform_6(%arg0: i32) -> (i32, i32) {
    %c0_i32 = arith.constant 0 : i32
    %c0_i32_0 = arith.constant 0 : i32
    %c0_i32_1 = arith.constant 0 : i32
    return %c0_i32, %c0_i32_0 : i32, i32
  }
  func.func @transform_7(%arg0: i32) -> (i32, i32) {
    %c0_i32 = arith.constant 0 : i32
    %c0_i32_0 = arith.constant 0 : i32
    return %arg0, %c0_i32 : i32, i32
  }
}

</mosaic_0001>

<bundles_post_ra>
// kernel: tpu_custom_call.1
= control target key start
LH: loop header
LB: loop body
LE: loop exit
PB: predicated region body
PF: predicated region fallthrough
CT: control target
= control target key end

     0   :  { %s1986_s0 = inlined_call_operand.hbm [shape: f32[256,128], index: 0, kind: input, shape index: {}]   ;;  %s1987_s1 = inlined_call_operand.hbm [shape: f32[128,128], index: 1, kind: input, shape index: {}]   ;;  %s1988_s2 = inlined_call_operand.vmem [shape: f32[1,128], index: 2, kind: input, shape index: {}]   ;;  %s1989_s3 = inlined_call_operand.hbm [shape: f32[128,128], index: 3, kind: input, shape index: {}]   ;;  %s1990_s4 = inlined_call_operand.vmem [shape: f32[1,128], index: 4, kind: input, shape index: {}]   ;;  %s1991_s5 = inlined_call_operand.hbm [shape: f32[128,128], index: 5, kind: input, shape index: {}]   ;;  %s1992_s6 = inlined_call_operand.vmem [shape: f32[1,128], index: 6, kind: input, shape index: {}]   ;;  %s1993_s7 = inlined_call_operand.hbm [shape: f32[256,128], index: 7, kind: output, shape index: {}]  }
   0x1   :  { %2000 = sst [smem:[#allocation15_spill]] %s1987_s1 }
   0x2   :  { %12 = vsyncpa [#allocation3], 0 }
   0x3   :  { %14 = vsyncpa [#allocation3 + $0x1], 0 }
   0x4   :  { %15 = vsyncpa [#allocation6], 0 }
   0x5   :  { %16 = vsyncpa [#allocation9], 0 }
   0x6   :  { %17 = vsyncpa [#allocation4], 0 }
   0x7   :  { %19 = vsyncpa [#allocation4 + $0x1], 0  ;;  %s1658_s24 = smov 0   ;;  %s1660_s25 = smov 0  }
   0x8   :  { %s1662_s26 = smov 0   ;;  %s1664_s27 = smov 0  }
   0x9 LB: > { %s1679_s28 = sadd.s32 4294967295, %s1607_s27   ;;  %s1027_s29 = sadd.s32 4294967294, %s1607_s27   ;;  %s1607_s27 = sphi %s1664_s27, %s2022_s27   ;;  %s1603_s26 = sphi %s1662_s26, %s2021_s26   ;;  %s1599_s25 = sphi %s1660_s25, %s2020_s25   ;;  %s1595_s24 = sphi %s1658_s24, %s2019_s24  }
   0xa   : > { %p45_p0 = scmp.ne.s32.totalorder %s1599_s25, %s1595_s24  ;;  %p1994_p1 = scmp.eq.s32.totalorder %s1679_s28, 0 }
   0xb   : > { %p195_p2 = scmp.eq.s32.totalorder %s1679_s28, 1  ;;  %p201_p3 = scmp.eq.s32.totalorder %s1027_s29, 1 }
   0xc   : > { %p1688_p4 = por %p1994_p1, %p45_p0  ;;  %p1028_p5 = scmp.ge.s32.totalorder %s1607_s27, 1 }
   0xd   : > { %p1693_p6 = por %p201_p3, %p45_p0  ;;  %p208_p7 = scmp.lt.s32.totalorder %s1607_s27, 3 }
   0xe   : > { %s2001_s30 = scalar_select %p1688_p4, 1, 0 }
   0xf   : > { %s2002_s8 = scalar_select %p1693_p6, 1, 0 }
  0x10   : > { %p1698_p8 = pnand %p1028_p5, %p208_p7  ;;  %s1609_s10 = smov [#allocation5]  }
  0x11   : > { %s220_s11 = sshll.u32 %s1609_s10, 4  ;;  %s1610_s13 = smov [#allocation7]   ;;  %s221_s11 = int_to_ptr.vmem [resolvable:$true] %s220_s11 }
  0x12   : > { %s2003_s9 = scalar_select %p1698_p8, 1, 0 }
  0x13   : > { %p1364_p9 = pneg %p1698_p8  ;;  %s236_s14 = sshll.u32 %s1610_s13, 4  ;;  %s237_s14 = int_to_ptr.vmem [resolvable:$true] %s236_s14 }
  0x14   : > { %s1611_s15 = smov [#allocation8]   ;;  %s1440_s17 = scalar_lea.vmem %s221_s11, 2048 }
  0x15   : > { %p1707_p11 = pnand %p1364_p9, %p1994_p1  ;;  %s252_s16 = sshll.u32 %s1611_s15, 4  ;;  %s253_s16 = int_to_ptr.vmem [resolvable:$true] %s252_s16 }
  0x16   : > { %p1441_p13 = scmp.ne.s32.totalorder %s221_s11, %s1440_s17  ;;  %p1448_p5 = scmp.lt.s32.totalorder %s221_s11, %s221_s11 }
  0x17   : > { %p1431_p12 = pneg %p1707_p11  ;;  %p1449_p7 = scmp.lt.s32.totalorder %s1440_s17, %s1440_s17 }
  0x19   : > { %p1443_p0 = pnand %p1441_p13, %p1431_p12  ;;  %p1450_p9 = por %p1449_p7, %p1448_p5 }
  0x1b   : > { %p1444_p3 = pneg %p1443_p0 }
  0x1d   : > { %p1451_p10 = pnand %p1450_p9, %p1444_p3 }
  0x1f   : > { %1454 = shalt.err (!%p1451_p10)
}
  0x20   : > { %s1995_s18 = smov 128   ;;  %s1996_s19 = smov 8  }
  0x21   : > { %s2005_s1 = sld [smem:[#allocation15_spill]]  ;;  %s1466_s22 = scalar_lea.vmem %s237_s14, 2048 }
  0x22   : > { %p1467_p13 = scmp.ne.s32.totalorder %s237_s14, %s1466_s22  ;;  %p1474_p3 = scmp.lt.s32.totalorder %s237_s14, %s237_s14 }
  0x23   : > { %p1475_p10 = scmp.lt.s32.totalorder %s1466_s22, %s1466_s22 }
  0x24   : > { %p1469_p0 = pnand %p1467_p13, %p1431_p12 }
  0x25   : > { %p1476_p7 = por %p1475_p10, %p1474_p3 }
  0x26   : > { %p1470_p5 = pneg %p1469_p0 }
  0x27   : > { %1367 = dma.hbm_to_vmem [thread:$0]  (!%p1707_p11), %s2005_s1, 2048, %s221_s11, [#allocation6], %s1995_s18, %s1995_s18, %s1996_s19  }
  0x28   : > { %p1477_p9 = pnand %p1476_p7, %p1470_p5 }
  0x2a   : > { %1480 = shalt.err (!%p1477_p9)
}
  0x2b   : > { %1370 = dma.hbm_to_vmem [thread:$0]  (!%p1707_p11), %s1989_s3, 2048, %s237_s14, [#allocation6], %s1995_s18, %s1995_s18, %s1996_s19  }
  0x2c   : > { %s1492_s10 = scalar_lea.vmem %s253_s16, 2048  ;;  %p1500_p3 = scmp.lt.s32.totalorder %s253_s16, %s253_s16 }
  0x2d   : > { %p1493_p1 = scmp.ne.s32.totalorder %s253_s16, %s1492_s10  ;;  %p1501_p5 = scmp.lt.s32.totalorder %s1492_s10, %s1492_s10 }
  0x2f   : > { %p1495_p13 = pnand %p1493_p1, %p1431_p12  ;;  %p1502_p10 = por %p1501_p5, %p1500_p3 }
  0x31   : > { %p1496_p0 = pneg %p1495_p13 }
  0x33   : > { %p1503_p7 = pnand %p1502_p10, %p1496_p0 }
  0x35   : > { %1506 = shalt.err (!%p1503_p7)
}
  0x36   : > { %1373 = dma.hbm_to_vmem [thread:$0]  (!%p1707_p11), %s1991_s5, 2048, %s253_s16, [#allocation9], %s1995_s18, %s1995_s18, %s1996_s19  }
  0x37   : > { %s1747_s14 = sadd.s32 1, %s1607_s27   ;;  %s32_s15 = sadd.s32 1, %s1603_s26 }
  0x38   : > { %s29_s12 = ssub.s32 %s1607_s27, %s1747_s14  ;;  %p39_p12 = scmp.ne.s32.totalorder %s1603_s26, %s1599_s25 }
  0x39   : > { %p30_p1 = scmp.eq.s32.totalorder %s29_s12, 0  ;;  %p40_p9 = scmp.eq.s32.totalorder %s1607_s27, 0 }
  0x3a   : > { %p1385_p13 = scmp.lt.s32.totalorder %s1607_s27, 2  ;;  %p1761_p3 = por %p195_p2, %p39_p12 }
  0x3b   : > { %s1757_s17 = scalar_select %p30_p1, %s1603_s26, %s32_s15  }
  0x3c   : > { %p41_p0 = por %p40_p9, %p39_p12  ;;  %s269_s21 = sand.u32 1, %s1603_s26  }
  0x3d   : > { %s2006_s20 = scalar_select %p1761_p3, 1, 0 }
  0x3e   : > { %s1050_s22 = sshll.u32 %s1607_s27, 11  ;;  %s1033_s16 = sshll.u32 %s269_s21, 7 }
  0x3f   : > { %s1770_s10 = scalar_lea.hbm %s1986_s0, %s1050_s22  ;;  %s273_s11 = scalar_lea.vmem [#allocation2], %s1033_s16 }
  0x40   : > { %s280_s13 = sshll.u32 %s273_s11, 4  ;;  %p1772_p11 = pnand %p1385_p13, %p41_p0  ;;  %s1776_s13 = int_to_ptr.vmem [resolvable:$true] %s280_s13 }
  0x41   : > { %s1778_s15 = scalar_lea.sflag [#allocation3], %s269_s21  ;;  %s1507_s18 = scalar_lea.hbm %s1770_s10, 2048 }
  0x42   : > { %p1508_p2 = scmp.ne.s32.totalorder %s1770_s10, %s1507_s18  ;;  %p1509_p5 = pneg %p1772_p11 }
  0x43   : > { %s1512_s16 = scalar_lea.hbm %s1986_s0, 4096  ;;  %p1513_p1 = scmp.lt.s32.totalorder %s1770_s10, %s1986_s0 }
  0x44   : > { %p1510_p10 = pnand %p1509_p5, %p1508_p2  ;;  %p1514_p12 = scmp.lt.s32.totalorder %s1512_s16, %s1507_s18 }
  0x46   : > { %p1511_p7 = pneg %p1510_p10  ;;  %p1515_p9 = por %p1514_p12, %p1513_p1 }
  0x48   : > { %p1516_p13 = pnand %p1515_p9, %p1511_p7 }
  0x4a   : > { %1519 = shalt.err (!%p1516_p13)
}
  0x4b   : > { %s1520_s21 = scalar_lea.vmem %s1776_s13, 2048  ;;  %s1614_s19 = smov [#allocation2]  }
  0x4c   : > { %p1521_p0 = scmp.ne.s32.totalorder %s1776_s13, %s1520_s21  ;;  %s1525_s1 = sshll.u32 %s1614_s19, 4  ;;  %s1526_s1 = int_to_ptr.vmem [resolvable:$false] %s1525_s1 }
  0x4d   : > { %s1527_s22 = scalar_lea.vmem %s1526_s1, 4096  ;;  %p1528_p10 = scmp.lt.s32.totalorder %s1776_s13, %s1526_s1 }
  0x4e   : > { %p1523_p6 = pnand %p1521_p0, %p1509_p5  ;;  %p1529_p3 = scmp.lt.s32.totalorder %s1527_s22, %s1520_s21 }
  0x50   : > { %p1524_p2 = pneg %p1523_p6  ;;  %p1530_p4 = por %p1529_p3, %p1528_p10 }
  0x52   : > { %p1531_p8 = pnand %p1530_p4, %p1524_p2 }
  0x54   : > { %1534 = shalt.err (!%p1531_p8)
}
  0x55   : > { %s2008_s18 = smov 8   ;;  %s2009_s23 = smov 128  }
  0x56   : > { %1377 = dma.hbm_to_vmem [thread:$0]  (!%p1772_p11), %s1770_s10, 2048, %s1776_s13, %s1778_s15, %s2009_s23, %s2009_s23, %s2008_s18  }
  0x57   : > { %p2010_p6 = scmp.ne.s32.totalorder %s2003_s9, 0 }
  0x58   : > { %s1805_s19 = sand.u32 (!%p2010_p6), 1, %s1599_s25   ;;  %p2011_p4 = scmp.ne.s32.totalorder (!%p2010_p6), %s2001_s30, 0 }
  0x59   : > { %292 = sbr.rel (%p2010_p6) target bundleno = 774 (0x306), region = 48  ;;  %s1037_s1 = sshll.u32 (!%p2010_p6), %s1805_s19, 7 }
  0x5a   : > { %s295_s16 = scalar_lea.sflag (!%p2010_p6), [#allocation3], %s1805_s19  ;;  %s1811_s12 = scalar_lea.vmem (!%p2010_p6), [#allocation2], %s1037_s1 }
  0x5e   : > { %1578 = dma.done.wait (%p2011_p4), %s295_s16, 2048  }
  0x5f   : > { %1580 = vsyncadd (%p2011_p4), %s295_s16, 4294965248  ;;  %p2012_p8 = scmp.eq.s32.totalorder %s1679_s28, 0 }
  0x61   : > { %1582 = dma.done.wait (%p2012_p8), [#allocation6], 4096   ;;  %p2013_p3 = pmov %p2012_p8 }
  0x63   : > { %1584 = vsyncadd (%p2013_p3), [#allocation6], 4294963200  ;;  %p2014_p11 = pmov %p2013_p3 }
  0x64   : > { %p2015_p5 = pmov %p2013_p3 }
  0x65   : > { %1586 = dma.done.wait (%p2014_p11), [#allocation9], 2048  }
  0x66   : > { %1588 = vsyncadd (%p2015_p5), [#allocation9], 4294965248  ;;  %v374_v0 = vld [vmem:[#allocation5 + $0x78] sm:$0xff]  ;;  %v373_v1 = vld [vmem:[#allocation5 + $0x70] sm:$0xff]  ;;  %s1918_s11 = scalar_lea.vmem [#allocation10], %s1037_s1  ;;  %s1051_s21 = sshll.u32 %s1679_s28, 11 }
  0x67   : > { %1148 = vmatprep.subr.mxu0 %v374_v0  ;;  %v372_v2 = vld [vmem:[#allocation5 + $0x68] sm:$0xff]  ;;  %v371_v3 = vld [vmem:[#allocation5 + $0x60] sm:$0xff]  ;;  %v370_v5 = vld [vmem:[#allocation5 + $0x58] sm:$0xff]  ;;  %s925_s22 = sshll.u32 %s1918_s11, 4  ;;  %s1939_s1 = scalar_lea.hbm %s1993_s7, %s1051_s21  ;;  %s1941_s22 = int_to_ptr.vmem [resolvable:$true] %s925_s22 }
  0x68   : > { %1149 = vmatpush3.msra.mxu0 %v374_v0  ;;  %v343_v4 = vld [vmem:[%s1811_s12] sm:$0xff]  ;;  %v369_v6 = vld [vmem:[#allocation5 + $0x50] sm:$0xff]  ;;  %v368_v7 = vld [vmem:[#allocation5 + $0x48] sm:$0xff]  ;;  %s912_s16 = scalar_lea.sflag [#allocation4], %s1805_s19  ;;  %s1535_s28 = scalar_lea.vmem %s1941_s22, 2048 }
  0x69   : > { %1150 = vmatprep.subr.mxu0 %v373_v1  ;;  %1180 = vmatprep.mubr.f32.mxu0 %v343_v4  ;;  %v558_v8 = vld [vmem:[#allocation7 + $0x78] sm:$0xff]  ;;  %v557_v9 = vld [vmem:[#allocation7 + $0x70] sm:$0xff]  ;;  %v367_v10 = vld [vmem:[#allocation5 + $0x40] sm:$0xff]  ;;  %p1536_p7 = scmp.ne.s32.totalorder %s1941_s22, %s1535_s28  ;;  %p2016_p1 = scmp.ne.s32.totalorder %s2006_s20, 0 }
  0x6a   : > { %1151 = vmatpush3.msra.mxu0 %v373_v1  ;;  %1204 = vmatprep.subr.mxu1 %v558_v8  ;;  %v556_v11 = vld [vmem:[#allocation7 + $0x68] sm:$0xff]  ;;  %v366_v12 = vld [vmem:[#allocation5 + $0x38] sm:$0xff]  ;;  %v555_v13 = vld [vmem:[#allocation7 + $0x60] sm:$0xff] }
  0x6b   : > { %1152 = vmatprep.subr.mxu0 %v372_v2  ;;  %1205 = vmatpush3.msra.mxu1 %v558_v8  ;;  %v365_v14 = vld [vmem:[#allocation5 + $0x30] sm:$0xff]  ;;  %v554_v15 = vld [vmem:[#allocation7 + $0x58] sm:$0xff]  ;;  %v364_v16 = vld [vmem:[#allocation5 + $0x28] sm:$0xff]  ;;  %p1537_p12 = pnand %p1536_p7, %p2016_p1 }
  0x6c   : > { %1153 = vmatpush3.msra.mxu0 %v372_v2  ;;  %1206 = vmatprep.subr.mxu1 %v557_v9  ;;  %v553_v17 = vld [vmem:[#allocation7 + $0x50] sm:$0xff]  ;;  %v363_v18 = vld [vmem:[#allocation5 + $0x20] sm:$0xff]  ;;  %v552_v19 = vld [vmem:[#allocation7 + $0x48] sm:$0xff] }
  0x6d   : > { %1154 = vmatprep.subr.mxu0 %v371_v3  ;;  %1207 = vmatpush3.msra.mxu1 %v557_v9  ;;  %v362_v20 = vld [vmem:[#allocation5 + $0x18] sm:$0xff]  ;;  %v551_v21 = vld [vmem:[#allocation7 + $0x40] sm:$0xff]  ;;  %v361_v22 = vld [vmem:[#allocation5 + $0x10] sm:$0xff]  ;;  %p1538_p9 = pneg %p1537_p12 }
  0x6e   : > { %1155 = vmatpush3.msra.mxu0 %v371_v3  ;;  %1208 = vmatprep.subr.mxu1 %v556_v11  ;;  %v550_v23 = vld [vmem:[#allocation7 + $0x38] sm:$0xff]  ;;  %v360_v24 = vld [vmem:[#allocation5 + $0x8] sm:$0xff]  ;;  %v549_v25 = vld [vmem:[#allocation7 + $0x30] sm:$0xff] }
  0x6f   : > { %1156 = vmatprep.subr.mxu0 %v370_v5  ;;  %1209 = vmatpush3.msra.mxu1 %v556_v11  ;;  %v359_v26 = vld [vmem:[#allocation5] sm:$0xff]  ;;  %v548_v27 = vld [vmem:[#allocation7 + $0x28] sm:$0xff]  ;;  %v345_v30 = vld [vmem:[%s1811_s12 + $0x10] sm:$0xff] }
  0x70   : > { %1157 = vmatpush3.msra.mxu0 %v370_v5  ;;  %1210 = vmatprep.subr.mxu1 %v555_v13  ;;  %v344_v28 = vld [vmem:[%s1811_s12 + $0x8] sm:$0xff]  ;;  %v547_v29 = vld [vmem:[#allocation7 + $0x20] sm:$0xff]  ;;  %v346_v31 = vld [vmem:[%s1811_s12 + $0x18] sm:$0xff] }
  0x71   : > { %1158 = vmatprep.subr.mxu0 %v369_v6  ;;  %1211 = vmatpush3.msra.mxu1 %v555_v13  ;;  %v347_v32 = vld [vmem:[%s1811_s12 + $0x20] sm:$0xff]  ;;  %v348_v33 = vld [vmem:[%s1811_s12 + $0x28] sm:$0xff]  ;;  %v349_v34 = vld [vmem:[%s1811_s12 + $0x30] sm:$0xff] }
  0x72   : > { %1159 = vmatpush3.msra.mxu0 %v369_v6  ;;  %1212 = vmatprep.subr.mxu1 %v554_v15  ;;  %v350_v35 = vld [vmem:[%s1811_s12 + $0x38] sm:$0xff]  ;;  %v351_v36 = vld [vmem:[%s1811_s12 + $0x40] sm:$0xff]  ;;  %v352_v37 = vld [vmem:[%s1811_s12 + $0x48] sm:$0xff] }
  0x73   : > { %1160 = vmatprep.subr.mxu0 %v368_v7  ;;  %1213 = vmatpush3.msra.mxu1 %v554_v15  ;;  %v353_v38 = vld [vmem:[%s1811_s12 + $0x50] sm:$0xff]  ;;  %v354_v39 = vld [vmem:[%s1811_s12 + $0x58] sm:$0xff]  ;;  %v355_v40 = vld [vmem:[%s1811_s12 + $0x60] sm:$0xff] }
  0x74   : > { %1161 = vmatpush3.msra.mxu0 %v368_v7  ;;  %1214 = vmatprep.subr.mxu1 %v553_v17  ;;  %v356_v41 = vld [vmem:[%s1811_s12 + $0x68] sm:$0xff]  ;;  %v357_v42 = vld [vmem:[%s1811_s12 + $0x70] sm:$0xff]  ;;  %v358_v43 = vld [vmem:[%s1811_s12 + $0x78] sm:$0xff]  ;;  %s1615_s12 = smov [#allocation10]  }
  0x75   : > { %1162 = vmatprep.subr.mxu0 %v367_v10  ;;  %1215 = vmatpush3.msra.mxu1 %v553_v17  ;;  %v546_v44 = vld [vmem:[#allocation7 + $0x18] sm:$0xff]  ;;  %v545_v45 = vld [vmem:[#allocation7 + $0x10] sm:$0xff]  ;;  %v544_v46 = vld [vmem:[#allocation7 + $0x8] sm:$0xff]  ;;  %s1539_s30 = sshll.u32 %s1615_s12, 4  ;;  %s1540_s30 = int_to_ptr.vmem [resolvable:$false] %s1539_s30 }
  0x76   : > { %1163 = vmatpush3.msra.mxu0 %v367_v10  ;;  %1216 = vmatprep.subr.mxu1 %v552_v19  ;;  %v543_v47 = vld [vmem:[#allocation7] sm:$0xff]  ;;  %v742_v48 = vld [vmem:[#allocation8 + $0x78] sm:$0xff]  ;;  %v741_v49 = vld [vmem:[#allocation8 + $0x70] sm:$0xff]  ;;  %s1541_s9 = scalar_lea.vmem %s1540_s30, 4096  ;;  %p1542_p13 = scmp.lt.s32.totalorder %s1941_s22, %s1540_s30 }
  0x77   : > { %1164 = vmatprep.subr.mxu0 %v366_v12  ;;  %1217 = vmatpush3.msra.mxu1 %v552_v19  ;;  %v740_v50 = vld [vmem:[#allocation8 + $0x68] sm:$0xff]  ;;  %v739_v51 = vld [vmem:[#allocation8 + $0x60] sm:$0xff]  ;;  %v1841_v52 = vld [vmem:[#allocation8 + $0x58] sm:$0xff]  ;;  %p1543_p0 = scmp.lt.s32.totalorder %s1541_s9, %s1535_s28 }
  0x78   : > { %1165 = vmatpush3.msra.mxu0 %v366_v12  ;;  %1218 = vmatprep.subr.mxu1 %v551_v21  ;;  %v1843_v53 = vld [vmem:[#allocation8 + $0x50] sm:$0xff]  ;;  %v1847_v54 = vld [vmem:[#allocation8 + $0x48] sm:$0xff]  ;;  %v1851_v55 = vld [vmem:[#allocation8 + $0x40] sm:$0xff] }
  0x79   : > { %1166 = vmatprep.subr.mxu0 %v365_v14  ;;  %1219 = vmatpush3.msra.mxu1 %v551_v21  ;;  %v1855_v56 = vld [vmem:[#allocation8 + $0x38] sm:$0xff]  ;;  %v1859_v57 = vld [vmem:[#allocation8 + $0x30] sm:$0xff]  ;;  %v1863_v58 = vld [vmem:[#allocation8 + $0x28] sm:$0xff]  ;;  %p1544_p2 = por %p1543_p0, %p1542_p13 }
  0x7a   : > { %1167 = vmatpush3.msra.mxu0 %v365_v14  ;;  %1220 = vmatprep.subr.mxu1 %v550_v23  ;;  %v1867_v59 = vld [vmem:[#allocation8 + $0x20] sm:$0xff] }
  0x7b   : > { %1168 = vmatprep.subr.mxu0 %v364_v16  ;;  %1221 = vmatpush3.msra.mxu1 %v550_v23  ;;  %v1876_v60 = vld [vmem:[%s1988_s2] ss:$0 sm:$0xff]  ;;  %p1545_p10 = pnand %p1544_p2, %p1538_p9 }
  0x7c   : > { %1169 = vmatpush3.msra.mxu0 %v364_v16  ;;  %1222 = vmatprep.subr.mxu1 %v549_v25 }
  0x7d   : > { %1170 = vmatprep.subr.mxu0 %v363_v18  ;;  %1223 = vmatpush3.msra.mxu1 %v549_v25 }
  0x7e   : > { %1171 = vmatpush3.msra.mxu0 %v363_v18  ;;  %1224 = vmatprep.subr.mxu1 %v548_v27 }
  0x7f   : > { %1172 = vmatprep.subr.mxu0 %v362_v20  ;;  %1225 = vmatpush3.msra.mxu1 %v548_v27 }
  0x80   : > { %1173 = vmatpush3.msra.mxu0 %v362_v20  ;;  %1226 = vmatprep.subr.mxu1 %v547_v29 }
  0x81   : > { %1174 = vmatprep.subr.mxu0 %v361_v22  ;;  %1227 = vmatpush3.msra.mxu1 %v547_v29 }
  0x82   : > { %1175 = vmatpush3.msra.mxu0 %v361_v22  ;;  %1228 = vmatprep.subr.mxu1 %v546_v44 }
  0x83   : > { %1176 = vmatprep.subr.mxu0 %v360_v24  ;;  %1229 = vmatpush3.msra.mxu1 %v546_v44 }
  0x84   : > { %1177 = vmatpush3.msra.mxu0 %v360_v24  ;;  %1230 = vmatprep.subr.mxu1 %v545_v45 }
  0x85   : > { %1178 = vmatprep.subr.mxu0 %v359_v26  ;;  %1231 = vmatpush3.msra.mxu1 %v545_v45  ;;  %v730_v45 = vld [vmem:[#allocation8 + $0x18] sm:$0xff] }
  0x86   : > { %1179 = vmatpush3.msra.mxu0 %v359_v26  ;;  %1232 = vmatprep.subr.mxu1 %v544_v46 }
  0x87   : > { %1181 = vmatmul.mubr.f32.vlgmr.msra.gmra.mxu0 %v344_v28  ;;  %1233 = vmatpush3.msra.mxu1 %v544_v46  ;;  %v729_v46 = vld [vmem:[#allocation8 + $0x10] sm:$0xff] }
  0x88   : > { %1183 = vmatprep.mubr.f32.mxu0 %v345_v30  ;;  %1234 = vmatprep.subr.mxu1 %v543_v47 }
  0x89   : > { %1235 = vmatpush3.msra.mxu1 %v543_v47  ;;  %1260 = vmatprep.subr.mxu0 %v742_v48  ;;  %v728_v47 = vld [vmem:[#allocation8 + $0x8] sm:$0xff] }
  0x8a   : > { %1316 = vmatprep.subr.mxu1 %v742_v48  ;;  %1261 = vmatpush3.msra.mxu0 %v742_v48 }
  0x8b   : > { %1184 = vmatmul.mubr.f32.gmra.mxu0 %v346_v31  ;;  %1262 = vmatprep.subr.mxu0 %v741_v49 }
  0x8c   : > { %1186 = vmatprep.mubr.f32.mxu0 %v347_v32  ;;  %1263 = vmatpush3.msra.mxu0 %v741_v49 }
  0x8d   : > { %1264 = vmatprep.subr.mxu0 %v740_v50 }
  0x8e   : > { %1265 = vmatpush3.msra.mxu0 %v740_v50 }
  0x8f   : > { %1187 = vmatmul.mubr.f32.gmra.mxu0 %v348_v33  ;;  %1266 = vmatprep.subr.mxu0 %v739_v51 }
  0x90   : > { %1189 = vmatprep.mubr.f32.mxu0 %v349_v34  ;;  %1267 = vmatpush3.msra.mxu0 %v739_v51 }
  0x91   : > { %1268 = vmatprep.subr.mxu0 %v1841_v52 }
  0x92   : > { %1269 = vmatpush3.msra.mxu0 %v1841_v52 }
  0x93   : > { %1190 = vmatmul.mubr.f32.gmra.mxu0 %v350_v35  ;;  %1270 = vmatprep.subr.mxu0 %v1843_v53 }
  0x94   : > { %1192 = vmatprep.mubr.f32.mxu0 %v351_v36  ;;  %1271 = vmatpush3.msra.mxu0 %v1843_v53 }
  0x95   : > { %1272 = vmatprep.subr.mxu0 %v1847_v54 }
  0x96   : > { %1273 = vmatpush3.msra.mxu0 %v1847_v54 }
  0x97   : > { %1193 = vmatmul.mubr.f32.gmra.mxu0 %v352_v37  ;;  %1274 = vmatprep.subr.mxu0 %v1851_v55 }
  0x98   : > { %1195 = vmatprep.mubr.f32.mxu0 %v353_v38  ;;  %1275 = vmatpush3.msra.mxu0 %v1851_v55 }
  0x99   : > { %1276 = vmatprep.subr.mxu0 %v1855_v56 }
  0x9a   : > { %1277 = vmatpush3.msra.mxu0 %v1855_v56 }
  0x9b   : > { %1196 = vmatmul.mubr.f32.gmra.mxu0 %v354_v39  ;;  %1278 = vmatprep.subr.mxu0 %v1859_v57 }
  0x9c   : > { %1198 = vmatprep.mubr.f32.mxu0 %v355_v40  ;;  %1279 = vmatpush3.msra.mxu0 %v1859_v57 }
  0x9d   : > { %1280 = vmatprep.subr.mxu0 %v1863_v58 }
  0x9e   : > { %1281 = vmatpush3.msra.mxu0 %v1863_v58 }
  0x9f   : > { %1199 = vmatmul.mubr.f32.gmra.mxu0 %v356_v41  ;;  %1282 = vmatprep.subr.mxu0 %v1867_v59 }
  0xa0   : > { %1201 = vmatprep.mubr.f32.mxu0 %v357_v42  ;;  %1283 = vmatpush3.msra.mxu0 %v1867_v59 }
  0xa1   : > { %1284 = vmatprep.subr.mxu0 %v730_v45 }
  0xa2   : > { %1285 = vmatpush3.msra.mxu0 %v730_v45 }
  0xa3   : > { %1202 = vmatmul.mubr.f32.gmra.mxu0 %v358_v43  ;;  %1286 = vmatprep.subr.mxu0 %v729_v46 }
  0xa4   : > { %1287 = vmatpush3.msra.mxu0 %v729_v46 }
  0xa5   : > { %1288 = vmatprep.subr.mxu0 %v728_v47 }
  0xa6   : > { %1289 = vmatpush3.msra.mxu0 %v728_v47 }
 0x147   : > { %v1182_v61 = vpop.f32.mrf.mxu0 }
 0x148   : > { %v454_v62 = vadd.f32 %v1182_v61, %v1876_v60 }
 0x149   : > { %v448_v63 = vpop.f32.mrf.mxu0 }
 0x14a   : > { %v449_v0 = vadd.f32 %v1876_v60, %v448_v63  ;;  %v528_v3 = vmax.f32 %v454_v62, 0.0 }
 0x14b   : > { %v1185_v1 = vpop.f32.mrf.mxu0 }
 0x14c   : > { %v527_v2 = vmax.f32 %v449_v0, 0.0  ;;  %v464_v4 = vadd.f32 %v1185_v1, %v1876_v60 }
 0x14d   : > { %v458_v5 = vpop.f32.mrf.mxu0 }
 0x14e   : > { %v459_v6 = vadd.f32 %v1876_v60, %v458_v5  ;;  %1236 = vmatprep.mubr.f32.mxu1 %v527_v2  ;;  %v530_v9 = vmax.f32 %v464_v4, 0.0 }
 0x14f   : > { %v1188_v7 = vpop.f32.mrf.mxu0  ;;  %1237 = vmatmul.mubr.f32.vlgmr.msra.gmra.mxu1 %v528_v3 }
 0x150   : > { %v529_v8 = vmax.f32 %v459_v6, 0.0  ;;  %1332 = vmatpush3.msra.mxu1 %v742_v48  ;;  %v474_v10 = vadd.f32 %v1188_v7, %v1876_v60  ;;  %v727_v48 = vld [vmem:[#allocation8] sm:$0xff] }
 0x151   : > { %v468_v11 = vpop.f32.mrf.mxu0  ;;  %1317 = vmatprep.subr.mxu1 %v741_v49  ;;  %1290 = vmatprep.subr.mxu0 %v727_v48 }
 0x152   : > { %v469_v12 = vadd.f32 %v1876_v60, %v468_v11  ;;  %1239 = vmatprep.mubr.f32.mxu1 %v529_v8  ;;  %1333 = vmatpush3.msra.mxu1 %v741_v49  ;;  %v532_v15 = vmax.f32 %v474_v10, 0.0  ;;  %v1043_v49 = vld [vmem:[%s1990_s4] ss:$0 sm:$0xff] }
 0x153   : > { %v1191_v13 = vpop.f32.mrf.mxu0  ;;  %1240 = vmatmul.mubr.f32.gmra.mxu1 %v530_v9  ;;  %1318 = vmatprep.subr.mxu1 %v740_v50 }
 0x154   : > { %v531_v14 = vmax.f32 %v469_v12, 0.0  ;;  %1334 = vmatpush3.msra.mxu1 %v740_v50  ;;  %v484_v16 = vadd.f32 %v1191_v13, %v1876_v60  ;;  %1291 = vmatpush3.msra.mxu0 %v727_v48 }
 0x155   : > { %v478_v17 = vpop.f32.mrf.mxu0  ;;  %1319 = vmatprep.subr.mxu1 %v739_v51 }
 0x156   : > { %v479_v18 = vadd.f32 %v1876_v60, %v478_v17  ;;  %1242 = vmatprep.mubr.f32.mxu1 %v531_v14  ;;  %1335 = vmatpush3.msra.mxu1 %v739_v51  ;;  %v534_v21 = vmax.f32 %v484_v16, 0.0 }
 0x157   : > { %v1194_v19 = vpop.f32.mrf.mxu0  ;;  %1243 = vmatmul.mubr.f32.gmra.mxu1 %v532_v15  ;;  %1320 = vmatprep.subr.mxu1 %v1841_v52 }
 0x158   : > { %v533_v20 = vmax.f32 %v479_v18, 0.0  ;;  %1336 = vmatpush3.msra.mxu1 %v1841_v52  ;;  %v494_v22 = vadd.f32 %v1194_v19, %v1876_v60 }
 0x159   : > { %v488_v23 = vpop.f32.mrf.mxu0  ;;  %1321 = vmatprep.subr.mxu1 %v1843_v53 }
 0x15a   : > { %v489_v24 = vadd.f32 %v1876_v60, %v488_v23  ;;  %1245 = vmatprep.mubr.f32.mxu1 %v533_v20  ;;  %1337 = vmatpush3.msra.mxu1 %v1843_v53  ;;  %v536_v27 = vmax.f32 %v494_v22, 0.0 }
 0x15b   : > { %v1197_v25 = vpop.f32.mrf.mxu0  ;;  %1246 = vmatmul.mubr.f32.gmra.mxu1 %v534_v21  ;;  %1322 = vmatprep.subr.mxu1 %v1847_v54 }
 0x15c   : > { %v535_v26 = vmax.f32 %v489_v24, 0.0  ;;  %1338 = vmatpush3.msra.mxu1 %v1847_v54  ;;  %v504_v28 = vadd.f32 %v1197_v25, %v1876_v60 }
 0x15d   : > { %v498_v29 = vpop.f32.mrf.mxu0  ;;  %1323 = vmatprep.subr.mxu1 %v1851_v55 }
 0x15e   : > { %v499_v30 = vadd.f32 %v1876_v60, %v498_v29  ;;  %1248 = vmatprep.mubr.f32.mxu1 %v535_v26  ;;  %1339 = vmatpush3.msra.mxu1 %v1851_v55  ;;  %v538_v33 = vmax.f32 %v504_v28, 0.0 }
 0x15f   : > { %v1200_v31 = vpop.f32.mrf.mxu0  ;;  %1249 = vmatmul.mubr.f32.gmra.mxu1 %v536_v27  ;;  %1324 = vmatprep.subr.mxu1 %v1855_v56 }
 0x160   : > { %v537_v32 = vmax.f32 %v499_v30, 0.0  ;;  %1340 = vmatpush3.msra.mxu1 %v1855_v56  ;;  %v514_v34 = vadd.f32 %v1200_v31, %v1876_v60 }
 0x161   : > { %v508_v35 = vpop.f32.mrf.mxu0  ;;  %1325 = vmatprep.subr.mxu1 %v1859_v57 }
 0x162   : > { %v509_v36 = vadd.f32 %v1876_v60, %v508_v35  ;;  %1251 = vmatprep.mubr.f32.mxu1 %v537_v32  ;;  %1341 = vmatpush3.msra.mxu1 %v1859_v57  ;;  %v540_v39 = vmax.f32 %v514_v34, 0.0  ;;  %v1044_v34 = vld [vmem:[%s1992_s6] ss:$0 sm:$0xff] }
 0x163   : > { %v1203_v37 = vpop.f32.mrf.mxu0  ;;  %1252 = vmatmul.mubr.f32.gmra.mxu1 %v538_v33  ;;  %1326 = vmatprep.subr.mxu1 %v1863_v58 }
 0x164   : > { %v539_v38 = vmax.f32 %v509_v36, 0.0  ;;  %1342 = vmatpush3.msra.mxu1 %v1863_v58  ;;  %v524_v40 = vadd.f32 %v1203_v37, %v1876_v60 }
 0x165   : > { %v518_v41 = vpop.f32.mrf.mxu0  ;;  %1327 = vmatprep.subr.mxu1 %v1867_v59 }
 0x166   : > { %v519_v42 = vadd.f32 %v1876_v60, %v518_v41  ;;  %1254 = vmatprep.mubr.f32.mxu1 %v539_v38  ;;  %1343 = vmatpush3.msra.mxu1 %v1867_v59  ;;  %v542_v44 = vmax.f32 %v524_v40, 0.0 }
 0x167   : > { %1255 = vmatmul.mubr.f32.gmra.mxu1 %v540_v39  ;;  %1328 = vmatprep.subr.mxu1 %v730_v45 }
 0x168   : > { %v541_v43 = vmax.f32 %v519_v42, 0.0  ;;  %1344 = vmatpush3.msra.mxu1 %v730_v45 }
 0x169   : > { %1329 = vmatprep.subr.mxu1 %v729_v46 }
 0x16a   : > { %1257 = vmatprep.mubr.f32.mxu1 %v541_v43  ;;  %1345 = vmatpush3.msra.mxu1 %v729_v46 }
 0x16b   : > { %1258 = vmatmul.mubr.f32.gmra.mxu1 %v542_v44  ;;  %1330 = vmatprep.subr.mxu1 %v728_v47 }
 0x16c   : > { %1346 = vmatpush3.msra.mxu1 %v728_v47 }
 0x16d   : > { %1331 = vmatprep.subr.mxu1 %v727_v48 }
 0x16e   : > { %1347 = vmatpush3.msra.mxu1 %v727_v48 }
 0x20f   : > { %v1238_v50 = vpop.f32.mrf.mxu1 }
 0x210   : > { %v638_v51 = vadd.f32 %v1238_v50, %v1043_v49 }
 0x211   : > { %v632_v52 = vpop.f32.mrf.mxu1 }
 0x212   : > { %v633_v53 = vadd.f32 %v1043_v49, %v632_v52  ;;  %v712_v56 = vmax.f32 %v638_v51, 0.0 }
 0x213   : > { %v1241_v54 = vpop.f32.mrf.mxu1 }
 0x214   : > { %v711_v55 = vmax.f32 %v633_v53, 0.0  ;;  %v648_v57 = vadd.f32 %v1241_v54, %v1043_v49 }
 0x215   : > { %v642_v58 = vpop.f32.mrf.mxu1 }
 0x216   : > { %v643_v59 = vadd.f32 %v1043_v49, %v642_v58  ;;  %1292 = vmatprep.mubr.f32.mxu0 %v711_v55  ;;  %v714_v62 = vmax.f32 %v648_v57, 0.0 }
 0x217   : > { %v1244_v60 = vpop.f32.mrf.mxu1  ;;  %1293 = vmatmul.mubr.f32.vlgmr.msra.gmra.mxu0 %v712_v56 }
 0x218   : > { %v713_v61 = vmax.f32 %v643_v59, 0.0  ;;  %v658_v63 = vadd.f32 %v1244_v60, %v1043_v49 }
 0x219   : > { %v652_v0 = vpop.f32.mrf.mxu1 }
 0x21a   : > { %v653_v1 = vadd.f32 %v1043_v49, %v652_v0  ;;  %1295 = vmatprep.mubr.f32.mxu0 %v713_v61  ;;  %v716_v4 = vmax.f32 %v658_v63, 0.0 }
 0x21b   : > { %v1247_v2 = vpop.f32.mrf.mxu1  ;;  %1296 = vmatmul.mubr.f32.gmra.mxu0 %v714_v62 }
 0x21c   : > { %v715_v3 = vmax.f32 %v653_v1, 0.0  ;;  %v668_v5 = vadd.f32 %v1247_v2, %v1043_v49 }
 0x21d   : > { %v662_v6 = vpop.f32.mrf.mxu1 }
 0x21e   : > { %v663_v7 = vadd.f32 %v1043_v49, %v662_v6  ;;  %1298 = vmatprep.mubr.f32.mxu0 %v715_v3  ;;  %v718_v10 = vmax.f32 %v668_v5, 0.0 }
 0x21f   : > { %v1250_v8 = vpop.f32.mrf.mxu1  ;;  %1299 = vmatmul.mubr.f32.gmra.mxu0 %v716_v4 }
 0x220   : > { %v717_v9 = vmax.f32 %v663_v7, 0.0  ;;  %v678_v11 = vadd.f32 %v1250_v8, %v1043_v49 }
 0x221   : > { %v672_v12 = vpop.f32.mrf.mxu1 }
 0x222   : > { %v673_v13 = vadd.f32 %v1043_v49, %v672_v12  ;;  %1301 = vmatprep.mubr.f32.mxu0 %v717_v9  ;;  %v720_v16 = vmax.f32 %v678_v11, 0.0 }
 0x223   : > { %v1253_v14 = vpop.f32.mrf.mxu1  ;;  %1302 = vmatmul.mubr.f32.gmra.mxu0 %v718_v10 }
 0x224   : > { %v719_v15 = vmax.f32 %v673_v13, 0.0  ;;  %v688_v17 = vadd.f32 %v1253_v14, %v1043_v49 }
 0x225   : > { %v682_v18 = vpop.f32.mrf.mxu1 }
 0x226   : > { %v683_v19 = vadd.f32 %v1043_v49, %v682_v18  ;;  %1304 = vmatprep.mubr.f32.mxu1 %v719_v15  ;;  %v722_v22 = vmax.f32 %v688_v17, 0.0 }
 0x227   : > { %v1256_v20 = vpop.f32.mrf.mxu1  ;;  %1305 = vmatmul.mubr.f32.vlgmr.msra.gmra.mxu1 %v720_v16 }
 0x228   : > { %v721_v21 = vmax.f32 %v683_v19, 0.0  ;;  %v698_v23 = vadd.f32 %v1256_v20, %v1043_v49 }
 0x229   : > { %v692_v24 = vpop.f32.mrf.mxu1 }
 0x22a   : > { %v693_v25 = vadd.f32 %v1043_v49, %v692_v24  ;;  %1307 = vmatprep.mubr.f32.mxu1 %v721_v21  ;;  %v724_v28 = vmax.f32 %v698_v23, 0.0 }
 0x22b   : > { %v1259_v26 = vpop.f32.mrf.mxu1  ;;  %1308 = vmatmul.mubr.f32.gmra.mxu1 %v722_v22 }
 0x22c   : > { %v723_v27 = vmax.f32 %v693_v25, 0.0  ;;  %v708_v29 = vadd.f32 %v1259_v26, %v1043_v49 }
 0x22d   : > { %v702_v30 = vpop.f32.mrf.mxu1 }
 0x22e   : > { %v703_v31 = vadd.f32 %v1043_v49, %v702_v30  ;;  %1310 = vmatprep.mubr.f32.mxu1 %v723_v27  ;;  %v726_v33 = vmax.f32 %v708_v29, 0.0 }
 0x22f   : > { %1311 = vmatmul.mubr.f32.gmra.mxu1 %v724_v28 }
 0x230   : > { %v725_v32 = vmax.f32 %v703_v31, 0.0 }
 0x232   : > { %1313 = vmatprep.mubr.f32.mxu1 %v725_v32 }
 0x233   : > { %1314 = vmatmul.mubr.f32.gmra.mxu1 %v726_v33 }
 0x2d7   : > { %v1294_v35 = vpop.f32.mrf.mxu0 }
 0x2d8   : > { %v822_v36 = vadd.f32 %v1294_v35, %v1044_v34 }
 0x2d9   : > { %v816_v37 = vpop.f32.mrf.mxu0 }
 0x2da   : > { %896 = vst [vmem:[%s1918_s11 + $0x8] sm:$0xff] %v822_v36  ;;  %v817_v38 = vadd.f32 %v1044_v34, %v816_v37 }
 0x2db   : > { %v1297_v39 = vpop.f32.mrf.mxu0 }
 0x2dc   : > { %895 = vst [vmem:[%s1918_s11] sm:$0xff] %v817_v38  ;;  %v832_v40 = vadd.f32 %v1297_v39, %v1044_v34 }
 0x2dd   : > { %v826_v41 = vpop.f32.mrf.mxu0 }
 0x2de   : > { %898 = vst [vmem:[%s1918_s11 + $0x18] sm:$0xff] %v832_v40  ;;  %v827_v42 = vadd.f32 %v1044_v34, %v826_v41 }
 0x2df   : > { %v1300_v43 = vpop.f32.mrf.mxu0 }
 0x2e0   : > { %897 = vst [vmem:[%s1918_s11 + $0x10] sm:$0xff] %v827_v42  ;;  %v842_v44 = vadd.f32 %v1300_v43, %v1044_v34 }
 0x2e1   : > { %v836_v45 = vpop.f32.mrf.mxu0 }
 0x2e2   : > { %900 = vst [vmem:[%s1918_s11 + $0x28] sm:$0xff] %v842_v44  ;;  %v837_v46 = vadd.f32 %v1044_v34, %v836_v45 }
 0x2e3   : > { %v1303_v47 = vpop.f32.mrf.mxu0 }
 0x2e4   : > { %899 = vst [vmem:[%s1918_s11 + $0x20] sm:$0xff] %v837_v46  ;;  %v852_v48 = vadd.f32 %v1303_v47, %v1044_v34 }
 0x2e5   : > { %v846_v49 = vpop.f32.mrf.mxu0 }
 0x2e6   : > { %902 = vst [vmem:[%s1918_s11 + $0x38] sm:$0xff] %v852_v48  ;;  %v847_v50 = vadd.f32 %v1044_v34, %v846_v49 }
 0x2e7   : > { %v1306_v51 = vpop.f32.mrf.mxu1 }
 0x2e8   : > { %901 = vst [vmem:[%s1918_s11 + $0x30] sm:$0xff] %v847_v50  ;;  %v862_v52 = vadd.f32 %v1306_v51, %v1044_v34 }
 0x2e9   : > { %v856_v53 = vpop.f32.mrf.mxu1 }
 0x2ea   : > { %904 = vst [vmem:[%s1918_s11 + $0x48] sm:$0xff] %v862_v52  ;;  %v857_v54 = vadd.f32 %v1044_v34, %v856_v53 }
 0x2eb   : > { %v1309_v55 = vpop.f32.mrf.mxu1 }
 0x2ec   : > { %903 = vst [vmem:[%s1918_s11 + $0x40] sm:$0xff] %v857_v54  ;;  %v872_v56 = vadd.f32 %v1309_v55, %v1044_v34 }
 0x2ed   : > { %v866_v57 = vpop.f32.mrf.mxu1 }
 0x2ee   : > { %906 = vst [vmem:[%s1918_s11 + $0x58] sm:$0xff] %v872_v56  ;;  %v867_v58 = vadd.f32 %v1044_v34, %v866_v57 }
 0x2ef   : > { %v1312_v59 = vpop.f32.mrf.mxu1 }
 0x2f0   : > { %905 = vst [vmem:[%s1918_s11 + $0x50] sm:$0xff] %v867_v58  ;;  %v882_v60 = vadd.f32 %v1312_v59, %v1044_v34 }
 0x2f1   : > { %v876_v61 = vpop.f32.mrf.mxu1 }
 0x2f2   : > { %908 = vst [vmem:[%s1918_s11 + $0x68] sm:$0xff] %v882_v60  ;;  %v877_v62 = vadd.f32 %v1044_v34, %v876_v61 }
 0x2f3   : > { %v1315_v63 = vpop.f32.mrf.mxu1 }
 0x2f4   : > { %907 = vst [vmem:[%s1918_s11 + $0x60] sm:$0xff] %v877_v62  ;;  %v892_v0 = vadd.f32 %v1315_v63, %v1044_v34 }
 0x2f5   : > { %v886_v1 = vpop.f32.mrf.mxu1 }
 0x2f6   : > { %910 = vst [vmem:[%s1918_s11 + $0x78] sm:$0xff] %v892_v0  ;;  %v887_v2 = vadd.f32 %v1044_v34, %v886_v1 }
 0x2f8   : > { %909 = vst [vmem:[%s1918_s11 + $0x70] sm:$0xff] %v887_v2 }
 0x2f9   : > { %1548 = shalt.err (!%p1545_p10)
}
 0x2fa   : > { %s1549_s10 = scalar_lea.hbm %s1939_s1, 2048  ;;  %s1553_s29 = scalar_lea.hbm %s1993_s7, 4096 }
 0x2fb   : > { %p1550_p6 = scmp.ne.s32.totalorder %s1939_s1, %s1549_s10  ;;  %p1554_p3 = scmp.lt.s32.totalorder %s1939_s1, %s1993_s7 }
 0x2fc   : > { %p1555_p11 = scmp.lt.s32.totalorder %s1553_s29, %s1549_s10 }
 0x2fd   : > { %p1551_p4 = pnand %p1550_p6, %p2016_p1 }
 0x2fe   : > { %p1556_p5 = por %p1555_p11, %p1554_p3 }
 0x2ff   : > { %p1552_p8 = pneg %p1551_p4 }
 0x301   : > { %p1557_p7 = pnand %p1556_p5, %p1552_p8 }
 0x303   : > { %1560 = shalt.err (!%p1557_p7)
}
 0x304   : > { %s1616_s18 = smov 128   ;;  %s1617_s23 = smov 8  }
 0x305   : > { %1362 = dma.vmem_to_hbm [thread:$0]  (%p2016_p1), %s1941_s22, 2048, %s1939_s1, %s912_s16, %s1616_s18, %s1616_s18, %s1617_s23  }
 0x306 PF: > { %s940_s28 = sand.u32 1, %s1595_s24   ;;  %p2017_p12 = scmp.ne.s32.totalorder %s2002_s8, 0 }
 0x307   : > { %p2018_p9 = scmp.ge.s32.totalorder %s1607_s27, 2  ;;  %s941_s12 = scalar_lea.sflag [#allocation4], %s940_s28 }
 0x309   : > { %p1379_p13 = pnand %p2018_p9, %p2017_p12 }
 0x30b   : > { %p1380_p0 = pneg %p1379_p13 }
 0x30d   : > { %1590 = dma.done.wait (%p1380_p0), %s941_s12, 2048  }
 0x30e   : > { %1592 = vsyncadd (%p1380_p0), %s941_s12, 4294965248  ;;  %p22_p2 = scmp.ge.s32.totalorder %s1747_s14, 4   ;;  %s2019_s24 = smov %s1599_s25 }
 0x30f   : > { %s2020_s25 = smov %s1603_s26  ;;  %s2021_s26 = smov %s1757_s17 }
 0x310   : > { %s2022_s27 = smov %s1747_s14  ;;  %24 = sbr.rel (!%p22_p2) target bundleno = 9 (0x9), region = 105 }
 0x315   :  { %946 = vsyncpa [#allocation3], 1 }
 0x316   :  { %948 = vsyncpa [#allocation3 + $0x1], 1 }
 0x317   :  { %949 = vsyncpa [#allocation6], 1 }
 0x318   :  { %950 = vsyncpa [#allocation9], 1 }
 0x319   :  { %951 = vsyncpa [#allocation4], 1 }
 0x31a   :  { %953 = vsyncpa [#allocation4 + $0x1], 1 }

</bundles_post_ra>
